<compile_context>
chip_gen: v7x
topology: tpu7x:2x2x1
jax: 0.10.0
libtpu: 0.0.40
codegen_flags: <defaults>
</compile_context>

<pallas_src>
import jax
import jax.numpy as jnp
from jax.experimental import pallas as pl
from jax.experimental.pallas import tpu as pltpu


_MAX_ROW_TILE = 4096  # multiple of 8; ~0.8 MB of f32 input per step at D_in+L=48


def _round_up(n, m):
    return ((n + m - 1) // m) * m


def _kernel(x_ref, yp_ref, wc_ref, bc_ref, out_ref, acc_ref):
    step = pl.program_id(1)

    @pl.when(step == 0)
    def _init():
        acc_ref[...] = jnp.zeros_like(acc_ref)

    # Single fused matmul (MXU) + gate with y_pred (VPU).
    g = (jnp.dot(x_ref[...], wc_ref[...],
                 preferred_element_type=jnp.float32)
         + bc_ref[...]) * yp_ref[...]
    # Rows-only (sublane) reduce into the resident VMEM accumulator; the final
    # cross-lane reduce / mean / +bp happen once, in the wrapper.
    acc_ref[...] += jnp.sum(g, axis=0, keepdims=True)

    @pl.when(step == pl.num_programs(1) - 1)
    def _finalize():
        out_ref[...] = jnp.reshape(acc_ref[...], out_ref.shape)


def score_nn_forward(x, y_pred, params, *, max_row_tile=_MAX_ROW_TILE):
    """Fused MyScoreNN forward. Returns a scalar (the mean score)."""
    wt, bt, wb, bb, wp, bp = params
    batch, d_in = x.shape
    label = wb.shape[1]

    # --- algebraic fusion of task_net -> bilinear -> projection (exact) ---
    wp_row = wp.reshape(1, label).astype(jnp.float32)          # (1, L)
    wb_s = wb.astype(jnp.float32) * wp_row                     # (H, L)
    wc = wt.astype(jnp.float32) @ wb_s                         # (D_in, L)
    bc = bt.astype(jnp.float32) @ wb_s + bb.astype(jnp.float32) * wp_row  # (1, L)
    bp_scalar = jnp.reshape(bp, ()).astype(jnp.float32)

    # --- batch tiling: cdiv grid with zero padding, 2-way parallel split ---
    tile_cap = max(8, _round_up(max_row_tile, 8))
    tb = min(_round_up(batch, 8), tile_cap)
    num_tiles = -(-batch // tb)
    n_par = 2 if num_tiles >= 2 else 1        # feeds both TCs on v7x megacore
    steps = -(-num_tiles // n_par)
    padded_rows = n_par * steps * tb

    xf = x.astype(jnp.float32)
    ypf = y_pred.astype(jnp.float32)
    if padded_rows != batch:
        pad = padded_rows - batch
        # y_pred pad rows are zero -> padded rows contribute exactly 0.
        xf = jnp.pad(xf, ((0, pad), (0, 0)))
        ypf = jnp.pad(ypf, ((0, pad), (0, 0)))

    def row_map(p, i):
        return (p * steps + i, 0)

    partial = pl.pallas_call(
        _kernel,
        grid=(n_par, steps),
        out_shape=jax.ShapeDtypeStruct((n_par, 1, label), jnp.float32),
        in_specs=[
            pl.BlockSpec((tb, d_in), row_map),                 # x      (tiled over B)
            pl.BlockSpec((tb, label), row_map),                # y_pred (tiled over B)
            pl.BlockSpec((d_in, label), lambda p, i: (0, 0)),  # Wc (resident)
            pl.BlockSpec((1, label), lambda p, i: (0, 0)),     # bc (resident)
        ],
        out_specs=pl.BlockSpec((1, 1, label), lambda p, i: (p, 0, 0)),
        scratch_shapes=[pltpu.VMEM((1, label), jnp.float32)],
        compiler_params=pltpu.CompilerParams(
            dimension_semantics=("parallel", "arbitrary")),
    )(xf, ypf, wc, bc)

    # Final lane reduce, mean over the true batch, and the projection bias.
    return jnp.sum(partial) / jnp.float32(batch) + bp_scalar


def init_params(key, d_in, hidden, label_dim):
    ks = jax.random.split(key, 6)
    scale = 0.1
    wt = scale * jax.random.normal(ks[0], (d_in, hidden), jnp.float32)
    bt = scale * jax.random.normal(ks[1], (1, hidden), jnp.float32)
    wb = scale * jax.random.normal(ks[2], (hidden, label_dim), jnp.float32)
    bb = scale * jax.random.normal(ks[3], (1, label_dim), jnp.float32)
    wp = scale * jax.random.normal(ks[4], (label_dim, 1), jnp.float32)
    bp = scale * jax.random.normal(ks[5], (1, 1), jnp.float32)
    return (wt, bt, wb, bb, wp, bp)


def reference_forward(x, y_pred, params):
    wt, bt, wb, bb, wp, bp = params
    y_hat = x @ wt + bt
    z = y_hat @ wb + bb
    s = (z * y_pred) @ wp + bp
    return jnp.mean(s)


if __name__ == "__main__":
    B, D_IN, HIDDEN, LABEL = 8, 32, 32, 16

    key = jax.random.PRNGKey(0)
    k_x, k_y, k_p = jax.random.split(key, 3)

    x = jax.random.normal(k_x, (B, D_IN), jnp.float32)
    y_pred = jax.random.normal(k_y, (B, LABEL), jnp.float32)
    params = init_params(k_p, D_IN, HIDDEN, LABEL)

    out = jax.block_until_ready(score_nn_forward(x, y_pred, params))
    ref = reference_forward(x, y_pred, params)
    assert jnp.allclose(out, ref, atol=1e-5, rtol=1e-5), (out, ref)

    # Also exercise the multi-tile / zero-padded / 2-way-parallel grid path
    # at a still-small shape (B=20 with an 8-row tile -> grid (2, 2), 12 pad rows).
    B2 = 20
    x2 = jax.random.normal(jax.random.PRNGKey(1), (B2, D_IN), jnp.float32)
    y2 = jax.random.normal(jax.random.PRNGKey(2), (B2, LABEL), jnp.float32)
    out2 = jax.block_until_ready(
        score_nn_forward(x2, y2, params, max_row_tile=8))
    ref2 = reference_forward(x2, y2, params)
    assert jnp.allclose(out2, ref2, atol=1e-5, rtol=1e-5), (out2, ref2)

    print("KERNEL_OK")
</pallas_src>

<mosaic_0001>
module attributes {stable_mosaic.version = 11 : i64} {
  func.func @_kernel(%arg0: i32, %arg1: i32, %arg2: memref<8x32xf32, #tpu.memory_space<vmem>>, %arg3: memref<8x16xf32, #tpu.memory_space<vmem>>, %arg4: memref<32x16xf32, #tpu.memory_space<vmem>>, %arg5: memref<1x16xf32, #tpu.memory_space<vmem>>, %arg6: memref<1x1x16xf32, #tpu.memory_space<vmem>>, %arg7: memref<1x16xf32, #tpu.memory_space<vmem>>) attributes {dimension_semantics = [#tpu.dimension_semantics<parallel>, #tpu.dimension_semantics<arbitrary>], iteration_bounds = array<i64: 1, 1>, scalar_prefetch = 0 : i64, scratch_operands = 1 : i64, tpu.core_type = #tpu.core_type<tc>, window_params = [{transform_indices = @transform_0, window_bounds = array<i64: 8, 32>}, {transform_indices = @transform_1, window_bounds = array<i64: 8, 16>}, {pipeline_mode = #tpu.pipeline_mode<synchronous>, transform_indices = @transform_2, window_bounds = array<i64: 32, 16>}, {pipeline_mode = #tpu.pipeline_mode<synchronous>, transform_indices = @transform_3, window_bounds = array<i64: 1, 16>}, {transform_indices = @transform_4, window_bounds = array<i64: 1, 1, 16>}]} {
    %c0_i32 = arith.constant 0 : i32
    %0 = arith.cmpi eq, %arg1, %c0_i32 : i32
    %1 = arith.extui %0 : i1 to i32
    %c0_i32_0 = arith.constant 0 : i32
    %2 = arith.cmpi ne, %1, %c0_i32_0 : i32
    scf.if %2 {
      %cst_15 = arith.constant 0.000000e+00 : f32
      %19 = vector.broadcast %cst_15 : f32 to vector<1x16xf32>
      %c0_16 = arith.constant 0 : index
      %c0_17 = arith.constant 0 : index
      %20 = vector.load %arg7[%c0_16, %c0_17] : memref<1x16xf32, #tpu.memory_space<vmem>>, vector<1x16xf32>
      tpu.vector_store %arg7[%c0_16, %c0_17], %19 {strides = array<i32>} : memref<1x16xf32, #tpu.memory_space<vmem>>, vector<1x16xf32>,
    } else {
    }
    %c0 = arith.constant 0 : index
    %c0_1 = arith.constant 0 : index
    %3 = vector.load %arg2[%c0, %c0_1] : memref<8x32xf32, #tpu.memory_space<vmem>>, vector<8x32xf32>
    %c0_2 = arith.constant 0 : index
    %c0_3 = arith.constant 0 : index
    %4 = vector.load %arg4[%c0_2, %c0_3] : memref<32x16xf32, #tpu.memory_space<vmem>>, vector<32x16xf32>
    %cst = arith.constant dense<0.000000e+00> : vector<8x16xf32>
    %5 = tpu.matmul %3, %4, %cst {dimension_numbers = #tpu.dot_dimension_numbers<[1], [0], [0], [1], [0, 0, 1, 1], [], []>} : vector<8x32xf32>, vector<32x16xf32>, vector<8x16xf32> -> vector<8x16xf32>
    %c0_4 = arith.constant 0 : index
    %c0_5 = arith.constant 0 : index
    %6 = vector.load %arg5[%c0_4, %c0_5] : memref<1x16xf32, #tpu.memory_space<vmem>>, vector<1x16xf32>
    %7 = vector.broadcast %6 : vector<1x16xf32> to vector<8x16xf32>
    %8 = arith.addf %5, %7 : vector<8x16xf32>
    %c0_6 = arith.constant 0 : index
    %c0_7 = arith.constant 0 : index
    %9 = vector.load %arg3[%c0_6, %c0_7] : memref<8x16xf32, #tpu.memory_space<vmem>>, vector<8x16xf32>
    %10 = arith.mulf %8, %9 : vector<8x16xf32>
    %c0_8 = arith.constant 0 : index
    %c0_9 = arith.constant 0 : index
    %11 = vector.load %arg7[%c0_8, %c0_9] : memref<1x16xf32, #tpu.memory_space<vmem>>, vector<1x16xf32>
    %cst_10 = arith.constant dense<0.000000e+00> : vector<16xf32>
    %12 = vector.multi_reduction <add>, %10, %cst_10 [0] : vector<8x16xf32> to vector<16xf32>
    %13 = vector.shape_cast %12 : vector<16xf32> to vector<1x16xf32>
    %14 = arith.addf %11, %13 : vector<1x16xf32>
    %c0_11 = arith.constant 0 : index
    %c0_12 = arith.constant 0 : index
    %15 = vector.load %arg7[%c0_11, %c0_12] : memref<1x16xf32, #tpu.memory_space<vmem>>, vector<1x16xf32>
    tpu.vector_store %arg7[%c0_11, %c0_12], %14 {strides = array<i32>} : memref<1x16xf32, #tpu.memory_space<vmem>>, vector<1x16xf32>,
    %c0_i32_13 = arith.constant 0 : i32
    %16 = arith.cmpi eq, %arg1, %c0_i32_13 : i32
    %17 = arith.extui %16 : i1 to i32
    %c0_i32_14 = arith.constant 0 : i32
    %18 = arith.cmpi ne, %17, %c0_i32_14 : i32
    scf.if %18 {
      %c0_15 = arith.constant 0 : index
      %c0_16 = arith.constant 0 : index
      %19 = vector.load %arg7[%c0_15, %c0_16] : memref<1x16xf32, #tpu.memory_space<vmem>>, vector<1x16xf32>
      %20 = vector.shape_cast %19 : vector<1x16xf32> to vector<1x1x16xf32>
      %c0_17 = arith.constant 0 : index
      %c0_18 = arith.constant 0 : index
      %c0_19 = arith.constant 0 : index
      %21 = vector.load %arg6[%c0_17, %c0_18, %c0_19] : memref<1x1x16xf32, #tpu.memory_space<vmem>>, vector<1x1x16xf32>
      tpu.vector_store %arg6[%c0_17, %c0_18, %c0_19], %20 {strides = array<i32>} : memref<1x1x16xf32, #tpu.memory_space<vmem>>, vector<1x1x16xf32>,
    } else {
    }
    return
  }
  func.func @transform_0(%arg0: i32, %arg1: i32) -> (i32, i32) {
    %c1_i32 = arith.constant 1 : i32
    %0 = arith.muli %arg0, %c1_i32 : i32
    %1 = arith.addi %0, %arg1 : i32
    %c0_i32 = arith.constant 0 : i32
    %c0_i32_0 = arith.constant 0 : i32
    return %1, %c0_i32 : i32, i32
  }
  func.func @transform_1(%arg0: i32, %arg1: i32) -> (i32, i32) {
    %c1_i32 = arith.constant 1 : i32
    %0 = arith.muli %arg0, %c1_i32 : i32
    %1 = arith.addi %0, %arg1 : i32
    %c0_i32 = arith.constant 0 : i32
    %c0_i32_0 = arith.constant 0 : i32
    return %1, %c0_i32 : i32, i32
  }
  func.func @transform_2(%arg0: i32, %arg1: i32) -> (i32, i32) {
    %c0_i32 = arith.constant 0 : i32
    %c0_i32_0 = arith.constant 0 : i32
    %c0_i32_1 = arith.constant 0 : i32
    return %c0_i32, %c0_i32_0 : i32, i32
  }
  func.func @transform_3(%arg0: i32, %arg1: i32) -> (i32, i32) {
    %c0_i32 = arith.constant 0 : i32
    %c0_i32_0 = arith.constant 0 : i32
    %c0_i32_1 = arith.constant 0 : i32
    return %c0_i32, %c0_i32_0 : i32, i32
  }
  func.func @transform_4(%arg0: i32, %arg1: i32) -> (i32, i32, i32) {
    %c0_i32 = arith.constant 0 : i32
    %c0_i32_0 = arith.constant 0 : i32
    %c0_i32_1 = arith.constant 0 : i32
    return %arg0, %c0_i32, %c0_i32_0 : i32, i32, i32
  }
}

</mosaic_0001>

<bundles_post_ra>
// kernel: tpu_custom_call.1
= control target key start
LH: loop header
LB: loop body
LE: loop exit
PB: predicated region body
PF: predicated region fallthrough
CT: control target
= control target key end

     0   :  { %vm56_vm0 = vcmask 122880   ;;  %v241_v3 = vmov 0.0|0.0   ;;  %v242_v6 = vmov 0.0   ;;  %vm243_vm1 = vmmov 0   ;;  %s306_s0 = inlined_call_operand.vmem [shape: f32[8,32], index: 0, kind: input, shape index: {}]   ;;  %s307_s1 = inlined_call_operand.vmem [shape: f32[8,16], index: 1, kind: input, shape index: {}]   ;;  %s308_s2 = inlined_call_operand.vmem [shape: f32[32,16], index: 2, kind: input, shape index: {}]   ;;  %s309_s3 = inlined_call_operand.vmem [shape: f32[1,16], index: 3, kind: input, shape index: {}]   ;;  %s310_s4 = inlined_call_operand.hbm [shape: f32[1,1,16], index: 4, kind: output, shape index: {}]  }
   0x1   :  { %v59_v0 = vld [vmem:[%s308_s2] sm:$0xff]  ;;  %v60_v1 = vld [vmem:[%s308_s2 + $0x8] sm:$0xff]  ;;  %v61_v2 = vld [vmem:[%s308_s2 + $0x10] sm:$0xff]  ;;  %207 = vmatprep.subr.bf16.mxu0 %v241_v3  ;;  %57 = vst.msk [vmem:[#allocation2] sm:$0x1] %vm56_vm0, %v242_v6  ;;  %204 = vmatprep.mubr.msk.f32.mxu0 %vm243_vm1, %v242_v6 }
   0x2   :  { %v208_v4 = vpack.c.bf16 %v60_v1, %v59_v0  ;;  %v62_v5 = vld [vmem:[%s308_s2 + $0x18] sm:$0xff] }
   0x3   :  { %9 = vsyncpa [#allocation4], 0  ;;  %v211_v7 = vpack.c.bf16 %v62_v5, %v61_v2  ;;  %v58_v8 = vld [vmem:[%s306_s0] sm:$0xff]  ;;  %vm70_vm2 = vcmask 261120   ;;  %vm147_vm3 = vcmask 130048   ;;  %s244_s0 = smov [#allocation3]  }
   0x4   :  { %209 = vmatpush3.bf16.msra.mxu0 %v208_v4  ;;  %v189_v9 = vld [vmem:[%s309_s3] ss:$0 sm:$0xff]  ;;  %s169_s3 = sshll.u32 %s244_s0, 4  ;;  %s170_s3 = int_to_ptr.vmem [resolvable:$true] %s169_s3 }
   0x5   :  { %210 = vmatprep.subr.bf16.mxu0 %v241_v3  ;;  %v144_v11 = vld [vmem:[%s307_s1] sm:$0xff]  ;;  %s217_s1 = scalar_lea.vmem %s170_s3, 16  ;;  %s221_s28 = scalar_lea.vmem %s170_s3, 32 }
   0x6   :  { %p218_p0 = scmp.ne.s32.totalorder %s170_s3, %s217_s1  ;;  %p222_p1 = scmp.lt.s32.totalorder %s170_s3, %s170_s3 }
   0x7   :  { %p223_p2 = scmp.lt.s32.totalorder %s221_s28, %s217_s1 }
   0x8   :  { %212 = vmatpush3.bf16.msra.mxu0 %v211_v7  ;;  %v146_v21 = vld [vmem:[#allocation2] sm:$0x1] }
   0x9   :  { %p224_p3 = por %p223_p2, %p222_p1 }
   0xb   :  { %205 = vmatmul.mubr.msk.f32.vlgmr.msra.gmra.mrb[0].mxu0 %vm70_vm2, %v58_v8  ;;  %p225_p4 = pnand %p224_p3, %p218_p0 }
  0xde   :  { %v140_v10 = vpop.f32.mrb[0].mxu0 }
  0xdf   :  { %v141_v12 = vadd.f32 %v189_v9, %v140_v10  ;;  %v206_v13 = vpop.f32.mrb[1].mxu0 }
  0xe1   :  { %v145_v14 = vmul.f32 %v144_v11, %v141_v12 }
  0xe3   :  { %v148_v15 = vsel %vm147_vm3, %v145_v14, 0.0 }
  0xe4   :  { %v149_v16 = vrot.slane %v148_v15, 4 }
  0xe6   :  { %v150_v17 = vadd.f32 %v149_v16, %v148_v15 }
  0xe8   :  { %v151_v18 = vrot.slane %v150_v17, 2 }
  0xea   :  { %v152_v19 = vadd.f32 %v151_v18, %v150_v17 }
  0xec   :  { %v153_v20 = vrot.slane %v152_v19, 1 }
  0xee   :  { %v154_v22 = vadd.f32 %v153_v20, %v152_v19 }
  0xf0   :  { %v155_v23 = vadd.f32 %v154_v22, %v146_v21 }
  0xf2   :  { %157 = vst.msk [vmem:[#allocation2] sm:$0x1] %vm56_vm0, %v155_v23 }
  0xf9   :  { %v161_v24 = vld [vmem:[#allocation2] sm:$0x1] }
  0xfa   :  { %162 = vst.msk [vmem:[#allocation3] sm:$0x1] %vm56_vm0, %v161_v24 }
  0xfb   :  { %228 = shalt.err (!%p225_p4)
}
  0xfc   :  { %s229_s5 = scalar_lea.hbm %s310_s4, 16 }
  0xfd   :  { %p230_p5 = scmp.ne.s32.totalorder %s310_s4, %s229_s5  ;;  %p233_p6 = scmp.lt.u32.totalorder %s229_s5, %s310_s4 }
  0xff   :  { %p235_p7 = pnand %p233_p6, %p230_p5 }
 0x101   :  { %238 = shalt.err (!%p235_p7)
}
 0x102   :  { %172 = dma.vmem_to_hbm [thread:$0]  %s170_s3, 16, %s310_s4, [#allocation4]  }
 0x103   :  { %239 = dma.done.wait [#allocation4], 16  }
 0x104   :  { %240 = vsyncadd [#allocation4], 4294967280 }
 0x105   :  { %176 = vsyncpa [#allocation4], 1 }

</bundles_post_ra>
